<compile_context>
chip_gen: v7x
topology: tpu7x:2x2x1
jax: 0.10.0
libtpu: 0.0.40
codegen_flags: <defaults>
</compile_context>

<pallas_src>
import jax
import jax.numpy as jnp
from jax.experimental import pallas as pl
from jax.experimental.pallas import tpu as pltpu


def _linear_kernel(x_ref, w_ref, b_ref, o_ref):
    # x_ref: (tile_m, d_model), w_ref: (d_model, c_out), b_ref: (1, c_out)
    acc = jax.lax.dot_general(
        x_ref[...],
        w_ref[...],
        dimension_numbers=(((1,), (0,)), ((), ())),   # x @ W^T with W pre-transposed
        preferred_element_type=jnp.float32,
    )
    o_ref[...] = (acc + b_ref[...]).astype(o_ref.dtype)


def _round_up(v, m):
    return (v + m - 1) // m * m


def decoder_forward(x, weight, bias, tile_m=1024):
    """x: (N, L, d_model); weight: (c_out, d_model); bias: (c_out,). Returns (N, L, c_out)."""
    N, L, d_model = x.shape
    c_out = weight.shape[0]
    M = N * L

    # tile_m: multiple of 8 sublanes, capped so we get >= 2 grid steps when M allows
    # (keeps both v7x TensorCores busy on the "parallel" M axis).
    tile_m = max(8, min(_round_up(tile_m, 8), _round_up(pl.cdiv(M, 2), 8)))
    grid_m = pl.cdiv(M, tile_m)

    x2d = x.reshape(M, d_model)
    w_t = jnp.transpose(weight)        # (d_model, c_out): one-time tiny transpose
    b2d = bias.reshape(1, c_out)

    itemsize = jnp.dtype(x.dtype).itemsize
    # Double-buffered x and out tiles + (conservatively 2x) weight + bias, then 2x headroom.
    vmem_bytes = 2 * itemsize * (
        tile_m * d_model + tile_m * c_out + d_model * c_out + c_out
    )
    vmem_limit = int(min(max(2 * vmem_bytes, 16 * 1024 * 1024), 48 * 1024 * 1024))

    cost = pl.CostEstimate(
        flops=2 * M * d_model * c_out,
        transcendentals=0,
        bytes_accessed=itemsize * (M * d_model + d_model * c_out + M * c_out + c_out),
    )

    out2d = pl.pallas_call(
        _linear_kernel,
        out_shape=jax.ShapeDtypeStruct((M, c_out), x.dtype),
        grid_spec=pltpu.PrefetchScalarGridSpec(
            num_scalar_prefetch=0,
            grid=(grid_m,),
            in_specs=[
                # x: tiled over M, full d_model on the lane axis (ragged last block OK)
                pl.BlockSpec((tile_m, d_model), lambda i: (i, 0)),
                # weight / bias: grid-invariant, resident in VMEM
                pl.BlockSpec((d_model, c_out), lambda i: (0, 0)),
                pl.BlockSpec((1, c_out), lambda i: (0, 0)),
            ],
            out_specs=pl.BlockSpec((tile_m, c_out), lambda i: (i, 0)),
        ),
        compiler_params=pltpu.CompilerParams(
            dimension_semantics=("parallel",),   # independent M tiles -> megacore sharding
            vmem_limit_bytes=vmem_limit,
        ),
        cost_estimate=cost,
    )(x2d, w_t, b2d)

    return out2d.reshape(N, L, c_out)


def init_decoder_params(key, d_model, c_out):
    # Deterministic init mimicking nn.Linear default (uniform +/- 1/sqrt(fan_in)).
    k_w, k_b = jax.random.split(key)
    bound = 1.0 / jnp.sqrt(jnp.float32(d_model))
    weight = jax.random.uniform(k_w, (c_out, d_model), jnp.float32, -bound, bound)
    bias = jax.random.uniform(k_b, (c_out,), jnp.float32, -bound, bound)
    return weight, bias


if __name__ == "__main__":
    key = jax.random.PRNGKey(0)
    k_x, k_p, k_x2 = jax.random.split(key, 3)

    # Primary small test: N=2, L=8, d_model=32, c_out=4 -> M=16, tile_m=8, grid=2.
    N, L, d_model, c_out = 2, 8, 32, 4
    x = jax.random.normal(k_x, (N, L, d_model), jnp.float32)
    weight, bias = init_decoder_params(k_p, d_model, c_out)

    out = decoder_forward(x, weight, bias)
    out = jax.block_until_ready(out)

    ref = x @ weight.T + bias
    assert out.shape == (N, L, c_out)
    assert jnp.allclose(out, ref, atol=1e-5, rtol=1e-5)

    # Ragged-path test: M = 2*7 = 14 not divisible by tile_m=8 -> partial last block,
    # c_out not a multiple of 128 -> masked lane stores.
    x2 = jax.random.normal(k_x2, (2, 7, d_model), jnp.float32)
    out2 = jax.block_until_ready(decoder_forward(x2, weight, bias))
    ref2 = x2 @ weight.T + bias
    assert out2.shape == (2, 7, c_out)
    assert jnp.allclose(out2, ref2, atol=1e-5, rtol=1e-5)

    print("KERNEL_OK")
</pallas_src>

<mosaic_0001>
module attributes {stable_mosaic.version = 11 : i64} {
  func.func @_linear_kernel(%arg0: i32, %arg1: memref<8x32xf32, #tpu.memory_space<vmem>>, %arg2: memref<32x4xf32, #tpu.memory_space<vmem>>, %arg3: memref<1x4xf32, #tpu.memory_space<vmem>>, %arg4: memref<8x4xf32, #tpu.memory_space<vmem>>) attributes {dimension_semantics = [#tpu.dimension_semantics<parallel>], iteration_bounds = array<i64: 2>, scalar_prefetch = 0 : i64, scratch_operands = 0 : i64, tpu.core_type = #tpu.core_type<tc>, window_params = [{transform_indices = @transform_0, window_bounds = array<i64: 8, 32>}, {pipeline_mode = #tpu.pipeline_mode<synchronous>, transform_indices = @transform_1, window_bounds = array<i64: 32, 4>}, {pipeline_mode = #tpu.pipeline_mode<synchronous>, transform_indices = @transform_2, window_bounds = array<i64: 1, 4>}, {transform_indices = @transform_3, window_bounds = array<i64: 8, 4>}]} {
    %c0 = arith.constant 0 : index
    %c0_0 = arith.constant 0 : index
    %0 = vector.load %arg1[%c0, %c0_0] : memref<8x32xf32, #tpu.memory_space<vmem>>, vector<8x32xf32>
    %c0_1 = arith.constant 0 : index
    %c0_2 = arith.constant 0 : index
    %1 = vector.load %arg2[%c0_1, %c0_2] : memref<32x4xf32, #tpu.memory_space<vmem>>, vector<32x4xf32>
    %cst = arith.constant dense<0.000000e+00> : vector<8x4xf32>
    %2 = tpu.matmul %0, %1, %cst {dimension_numbers = #tpu.dot_dimension_numbers<[1], [0], [0], [1], [0, 0, 1, 1], [], []>} : vector<8x32xf32>, vector<32x4xf32>, vector<8x4xf32> -> vector<8x4xf32>
    %c0_3 = arith.constant 0 : index
    %c0_4 = arith.constant 0 : index
    %3 = vector.load %arg3[%c0_3, %c0_4] : memref<1x4xf32, #tpu.memory_space<vmem>>, vector<1x4xf32>
    %4 = vector.broadcast %3 : vector<1x4xf32> to vector<8x4xf32>
    %5 = arith.addf %2, %4 : vector<8x4xf32>
    %c0_5 = arith.constant 0 : index
    %c0_6 = arith.constant 0 : index
    %6 = vector.load %arg4[%c0_5, %c0_6] : memref<8x4xf32, #tpu.memory_space<vmem>>, vector<8x4xf32>
    tpu.vector_store %arg4[%c0_5, %c0_6], %5 {strides = array<i32>} : memref<8x4xf32, #tpu.memory_space<vmem>>, vector<8x4xf32>,
    return
  }
  func.func @transform_0(%arg0: i32) -> (i32, i32) {
    %c0_i32 = arith.constant 0 : i32
    %c0_i32_0 = arith.constant 0 : i32
    return %arg0, %c0_i32 : i32, i32
  }
  func.func @transform_1(%arg0: i32) -> (i32, i32) {
    %c0_i32 = arith.constant 0 : i32
    %c0_i32_0 = arith.constant 0 : i32
    %c0_i32_1 = arith.constant 0 : i32
    return %c0_i32, %c0_i32_0 : i32, i32
  }
  func.func @transform_2(%arg0: i32) -> (i32, i32) {
    %c0_i32 = arith.constant 0 : i32
    %c0_i32_0 = arith.constant 0 : i32
    %c0_i32_1 = arith.constant 0 : i32
    return %c0_i32, %c0_i32_0 : i32, i32
  }
  func.func @transform_3(%arg0: i32) -> (i32, i32) {
    %c0_i32 = arith.constant 0 : i32
    %c0_i32_0 = arith.constant 0 : i32
    return %arg0, %c0_i32 : i32, i32
  }
}

</mosaic_0001>

<bundles_post_ra>
// kernel: tpu_custom_call.1
= control target key start
LH: loop header
LB: loop body
LE: loop exit
PB: predicated region body
PF: predicated region fallthrough
CT: control target
= control target key end

     0   :  { %s382_s12 = smov 0   ;;  %s414_s0 = inlined_call_operand.vmem [shape: f32[16,32], index: 0, kind: input, shape index: {}]   ;;  %s415_s1 = inlined_call_operand.vmem [shape: f32[32,4], index: 1, kind: input, shape index: {}]   ;;  %s416_s2 = inlined_call_operand.vmem [shape: f32[1,4], index: 2, kind: input, shape index: {}]   ;;  %s417_s3 = inlined_call_operand.vmem [shape: f32[16,4], index: 3, kind: output, shape index: {}]  }
   0x1 LB: > { %s307_s13 = sadd.s32 4294967295, %s357_s12   ;;  %p311_p0 = scmp.ge.s32.totalorder %s357_s12, 1  ;;  %s357_s12 = sphi %s382_s12, %s13_s12  }
   0x2   : > { %p136_p1 = scmp.lt.s32.totalorder %s357_s12, 3 }
   0x4   : > { %p137_p2 = pnand %p311_p0, %p136_p1 }
   0x5   : > { %v167_v0 = vld [vmem:[%s415_s1] sm:$0xff] (!%p137_p2)  ;;  %v168_v1 = vld [vmem:[%s415_s1 + $0x8] sm:$0xff] (!%p137_p2)  ;;  %v169_v2 = vld [vmem:[%s415_s1 + $0x10] sm:$0xff] (!%p137_p2)  ;;  %v359_v3 = vmov (!%p137_p2), 0.0|0.0   ;;  %vm360_vm0 = vmmov (!%p137_p2), 0   ;;  %v361_v6 = vmov (!%p137_p2), 0.0  }
   0x6   : > { %140 = sbr.rel (%p137_p2) target bundleno = 232 (0xe8), region = 32  ;;  %334 = vmatprep.subr.bf16.mxu0 (!%p137_p2), %v359_v3  ;;  %v335_v4 = vpack.c.bf16 (!%p137_p2), %v168_v1, %v167_v0  ;;  %v170_v5 = vld [vmem:[%s415_s1 + $0x18] sm:$0xff] (!%p137_p2)  ;;  %331 = vmatprep.mubr.msk.f32.mxu0 (!%p137_p2), %vm360_vm0, %v361_v6  ;;  %p158_p3 = scmp.lt.s32.totalorder (!%p137_p2), %s307_s13, 1  ;;  %vm178_vm1 = vcmask (!%p137_p2), 261120   ;;  %v314_v9 = vld [vmem:[%s416_s2] ss:$0 sm:$0xff] (!%p137_p2) }
   0x7   : > { %v338_v7 = vpack.c.bf16 (!%p137_p2), %v170_v5, %v169_v2  ;;  %vm252_vm2 = vcmask (!%p137_p2), 31744  }
   0x8   : > { %336 = vmatpush3.bf16.msra.mxu0 (!%p137_p2), %v335_v4 }
   0x9   : > { %337 = vmatprep.subr.bf16.mxu0 (!%p137_p2), %v359_v3 }
   0xc   : > { %339 = vmatpush3.bf16.msra.mxu0 (!%p137_p2), %v338_v7 }
   0xd   : > { %s419_s13 = smov (!%p158_p3, %s307_s13), 1 }
   0xe   : > { %s312_s22 = sshll.u32 %s419_s13, 3 }
   0xf   : > { %s161_s25 = scalar_lea.vmem %s414_s0, %s312_s22  ;;  %s165_s30 = scalar_lea.vmem %s417_s3, %s312_s22 }
  0x10   : > { %v166_v8 = vld [vmem:[%s161_s25] sm:$0xff] }
  0x11   : > { %332 = vmatmul.mubr.msk.f32.vlgmr.msra.gmra.mrb[0].mxu0 %vm178_vm1, %v166_v8 }
  0xe4   : > { %v248_v10 = vpop.f32.mrb[0].mxu0 }
  0xe5   : > { %v249_v11 = vadd.f32 %v314_v9, %v248_v10  ;;  %v333_v12 = vpop.f32.mrb[1].mxu0 }
  0xe7   : > { %253 = vst.msk [vmem:[%s165_s30] sm:$0xff] %vm252_vm2, %v249_v11 }
  0xe8 PF: > { %s13_s12 = sadd.s32 1, %s357_s12  }
  0xe9   : > { %p10_p4 = scmp.ge.s32.totalorder %s13_s12, 4  }
  0xeb   :  { %12 = sbr.rel (!%p10_p4) target bundleno = 1 (0x1), region = 62 }

</bundles_post_ra>
